<compile_context>
chip_gen: v7x
topology: tpu7x:2x2x1
jax: 0.10.0
libtpu: 0.0.40
codegen_flags: <defaults>
</compile_context>

<pallas_src>
import numpy as np
import jax
import jax.numpy as jnp
from jax.experimental import pallas as pl
from jax.experimental.pallas import tpu as pltpu


def _upsample_nearest_kernel(x_ref, s_ref, o_ref):
    # One MXU matmul per grid step: (Br, W) @ (W, s*s*W) -> (Br, s*s*W).
    # 0/1 selector + f32 accumulation (+HIGHEST precision on the f32 path)
    # keeps the copy exact; the cast happens as part of the lane-dense store.
    acc = jnp.dot(x_ref[...], s_ref[...],
                  preferred_element_type=jnp.float32,
                  precision=jax.lax.Precision.HIGHEST)
    o_ref[...] = acc.astype(o_ref.dtype)


def _pick_row_block(R, W, Ko, itemsize):
    """Rows of the flattened (N*C*H, W) problem handled per grid step."""
    TARGET_OUT = 2 << 20      # ~2 MiB output block: HBM-roofline sweet spot
    VMEM_BUDGET = 10 << 20    # stays well under a 32 MiB scoped-VMEM limit
    sel_bytes = 2 * W * Ko * itemsize           # resident selector (conservative x2)
    per_row = 2 * (W + Ko) * itemsize           # double-buffered input + output row
    cap = max(8, (VMEM_BUDGET - sel_bytes) // per_row)
    target = max(8, TARGET_OUT // max(1, Ko * itemsize))
    want = int(min(cap, target))
    if R <= want:
        return R                                # full extent -> always legal
    best = None
    for d in range(8, want + 1, 8):             # largest aligned divisor <= want
        if R % d == 0:
            best = d
    if best is not None:
        return best
    # No aligned divisor: multiple-of-8 block + cdiv grid (Pallas masks the
    # ragged tail block; rows are independent so garbage tail rows are dropped).
    return min(R, max(8, (want // 8) * 8))


def upsampling_nearest_2d(x, scale_factor=2.0):
    """Equivalent of F.interpolate(x, scale_factor=scale_factor, mode='nearest'), x in NCHW."""
    N, C, H, W = x.shape
    s = int(round(float(scale_factor)))
    # TODO(synk): only integer scale factors are handled (module default is 2.0).
    assert float(s) == float(scale_factor) and s >= 1, "non-integer scale_factor unsupported"
    assert jnp.issubdtype(x.dtype, jnp.floating), "floating-point inputs only"
    if s == 1:
        return x

    dtype = x.dtype
    itemsize = jnp.dtype(dtype).itemsize
    Wo = W * s
    Ko = s * Wo                  # one flattened output row = s copies of a width-upsampled row
    R = N * C * H

    # 0/1 selector (exact in bf16/f32):  S[w, c] = (w == (c % Wo) // s)
    cols = np.arange(Ko)
    sel = (np.arange(W)[:, None] == ((cols % Wo) // s)[None, :])
    S = jnp.asarray(sel, dtype=dtype)
    # TODO(synk): for extremely wide maps (W*Ko*itemsize >> VMEM) the selector
    # itself would need tiling along W; not needed for this UNet's map sizes.

    Br = _pick_row_block(R, W, Ko, itemsize)
    x2 = x.reshape(R, W)

    out2 = pl.pallas_call(
        _upsample_nearest_kernel,
        out_shape=jax.ShapeDtypeStruct((R, Ko), dtype),
        grid=(pl.cdiv(R, Br),),
        in_specs=[
            pl.BlockSpec((Br, W), lambda i: (i, 0)),
            pl.BlockSpec((W, Ko), lambda i: (0, 0)),   # resident selector (constant index_map)
        ],
        out_specs=pl.BlockSpec((Br, Ko), lambda i: (i, 0)),
        compiler_params=pltpu.CompilerParams(
            dimension_semantics=("parallel",),
            vmem_limit_bytes=32 * 1024 * 1024),
    )(x2, S)
    return out2.reshape(N, C, H * s, W * s)


if __name__ == "__main__":
    key = jax.random.PRNGKey(0)

    def _ref_nearest(x_np, s):
        return np.repeat(np.repeat(x_np, s, axis=2), s, axis=3)

    cases = [
        ((2, 4, 16, 16), jnp.float32),    # UNet-ish small case
        ((1, 8, 64, 64), jnp.float32),    # wider map: lane-dense >= 128 output rows
        ((1, 2, 6, 10), jnp.float32),     # odd shape: full-extent blocks
        ((2, 16, 32, 32), jnp.bfloat16),  # bf16 path (native bf16 MXU matmul)
    ]
    for shp, dt in cases:
        key, sub = jax.random.split(key)
        x = jax.random.normal(sub, shp, dtype=jnp.float32).astype(dt)
        y = jax.block_until_ready(upsampling_nearest_2d(x, scale_factor=2.0))
        ref = _ref_nearest(np.asarray(x, dtype=np.float32), 2)
        assert y.shape == ref.shape, (y.shape, ref.shape)
        # Nearest upsample is a copy; tiny slack only for MXU pass ordering on f32.
        np.testing.assert_allclose(np.asarray(y, dtype=np.float32), ref,
                                   rtol=1e-5, atol=1e-6)

    print("KERNEL_OK")
</pallas_src>

<mosaic_0001>
module attributes {stable_mosaic.version = 11 : i64} {
  func.func @_upsample_nearest_kernel(%arg0: i32, %arg1: memref<128x16xf32, #tpu.memory_space<vmem>>, %arg2: memref<16x64xf32, #tpu.memory_space<vmem>>, %arg3: memref<128x64xf32, #tpu.memory_space<vmem>>) attributes {dimension_semantics = [#tpu.dimension_semantics<parallel>], iteration_bounds = array<i64: 1>, scalar_prefetch = 0 : i64, scratch_operands = 0 : i64, tpu.core_type = #tpu.core_type<tc>, window_params = [{transform_indices = @transform_0, window_bounds = array<i64: 128, 16>}, {pipeline_mode = #tpu.pipeline_mode<synchronous>, transform_indices = @transform_1, window_bounds = array<i64: 16, 64>}, {transform_indices = @transform_2, window_bounds = array<i64: 128, 64>}]} {
    %c0 = arith.constant 0 : index
    %c0_0 = arith.constant 0 : index
    %0 = vector.load %arg1[%c0, %c0_0] : memref<128x16xf32, #tpu.memory_space<vmem>>, vector<128x16xf32>
    %c0_1 = arith.constant 0 : index
    %c0_2 = arith.constant 0 : index
    %1 = vector.load %arg2[%c0_1, %c0_2] : memref<16x64xf32, #tpu.memory_space<vmem>>, vector<16x64xf32>
    %cst = arith.constant dense<0.000000e+00> : vector<128x64xf32>
    %2 = tpu.matmul %0, %1, %cst {dimension_numbers = #tpu.dot_dimension_numbers<[1], [0], [0], [1], [0, 0, 1, 1], [], []>, precision = #tpu.contract_precision<fp32>} : vector<128x16xf32>, vector<16x64xf32>, vector<128x64xf32> -> vector<128x64xf32>
    %c0_3 = arith.constant 0 : index
    %c0_4 = arith.constant 0 : index
    %3 = vector.load %arg3[%c0_3, %c0_4] : memref<128x64xf32, #tpu.memory_space<vmem>>, vector<128x64xf32>
    tpu.vector_store %arg3[%c0_3, %c0_4], %2 {strides = array<i32>} : memref<128x64xf32, #tpu.memory_space<vmem>>, vector<128x64xf32>,
    return
  }
  func.func @transform_0(%arg0: i32) -> (i32, i32) {
    %c0_i32 = arith.constant 0 : i32
    %c0_i32_0 = arith.constant 0 : i32
    return %arg0, %c0_i32 : i32, i32
  }
  func.func @transform_1(%arg0: i32) -> (i32, i32) {
    %c0_i32 = arith.constant 0 : i32
    %c0_i32_0 = arith.constant 0 : i32
    %c0_i32_1 = arith.constant 0 : i32
    return %c0_i32, %c0_i32_0 : i32, i32
  }
  func.func @transform_2(%arg0: i32) -> (i32, i32) {
    %c0_i32 = arith.constant 0 : i32
    %c0_i32_0 = arith.constant 0 : i32
    return %arg0, %c0_i32 : i32, i32
  }
}

</mosaic_0001>

<bundles_post_ra>
// kernel: tpu_custom_call.1
= control target key start
LH: loop header
LB: loop body
LE: loop exit
PB: predicated region body
PF: predicated region fallthrough
CT: control target
= control target key end

     0   :  { %vm29_vm0 = vcmask 130048   ;;  %vm1182_vm1 = vcmask 523264   ;;  %s1926_s1 = inlined_call_operand.vmem [shape: f32[16,64], index: 1, kind: input, shape index: {}]   ;;  %s1927_s0 = inlined_call_operand.vmem [shape: f32[128,16], index: 0, kind: input, shape index: {}]   ;;  %s1928_s2 = inlined_call_operand.vmem [shape: f32[128,64], index: 2, kind: output, shape index: {}]  }
   0x1   :  { %v27_v0 = vld [vmem:[%s1926_s1] sm:$0xff]  ;;  %v28_v1 = vld [vmem:[%s1926_s1 + $0x8] sm:$0xff]  ;;  %v13_v7 = vld [vmem:[%s1927_s0 + $0x10] sm:$0xff] }
   0x2   :  { %v11_v2 = vld [vmem:[%s1927_s0] sm:$0xff]  ;;  %v79_v3 = vand.u32 4294901760, %v27_v0  ;;  %v82_v4 = vand.u32 4294901760, %v28_v1  ;;  %v12_v6 = vld [vmem:[%s1927_s0 + $0x8] sm:$0xff]  ;;  %v14_v8 = vld [vmem:[%s1927_s0 + $0x18] sm:$0xff]  ;;  %v37_v11 = vsel %vm29_vm0, %v13_v7, 0 }
   0x3   :  { %v31_v5 = vsel %vm29_vm0, %v11_v2, 0  ;;  %v34_v10 = vsel %vm29_vm0, %v12_v6, 0  ;;  %v40_v12 = vsel %vm29_vm0, %v14_v8, 0  ;;  %v15_v13 = vld [vmem:[%s1927_s0 + $0x20] sm:$0xff]  ;;  %v1629_v16 = vand.u32 4294901760, %v37_v11  ;;  %v16_v18 = vld [vmem:[%s1927_s0 + $0x28] sm:$0xff] }
   0x4   :  { %v1617_v9 = vand.u32 4294901760, %v31_v5  ;;  %v1625_v14 = vpack.c.bf16 %v82_v4, %v79_v3  ;;  %v1627_v15 = vand.u32 4294901760, %v34_v10  ;;  %v1631_v17 = vsub.f32 %v27_v0, %v79_v3  ;;  %v17_v39 = vld [vmem:[%s1927_s0 + $0x30] sm:$0xff]  ;;  %v18_v48 = vld [vmem:[%s1927_s0 + $0x38] sm:$0xff]  ;;  %v19_v49 = vld [vmem:[%s1927_s0 + $0x40] sm:$0xff] }
   0x5   :  { %v1639_v20 = vsub.f32 %v28_v1, %v82_v4  ;;  %v1641_v21 = vand.u32 4294901760, %v40_v12  ;;  %v43_v22 = vsel %vm29_vm0, %v15_v13, 0  ;;  %v1650_v24 = vsub.f32 %v37_v11, %v1629_v16  ;;  %v20_v50 = vld [vmem:[%s1927_s0 + $0x48] sm:$0xff]  ;;  %v21_v59 = vld [vmem:[%s1927_s0 + $0x50] sm:$0xff]  ;;  %v22_v60 = vld [vmem:[%s1927_s0 + $0x58] sm:$0xff] }
   0x6   :  { %v1637_v19 = vsub.f32 %v31_v5, %v1617_v9  ;;  %1492 = vmatprep.subr.bf16.mxu0 %v1625_v14  ;;  %1480 = vmatprep.subr.bf16.mxu1 %v1625_v14  ;;  %v1647_v23 = vsub.f32 %v34_v10, %v1627_v15  ;;  %v308_v25 = vand.u32 4294901760, %v1631_v17  ;;  %v1653_v26 = vand.u32 4294901760, %v43_v22  ;;  %v23_v61 = vld [vmem:[%s1927_s0 + $0x60] sm:$0xff] }
   0x7   :  { %1494 = vmatpush3.bf16.msra.mxu0 %v1625_v14  ;;  %1482 = vmatpush3.bf16.msra.mxu1 %v1625_v14  ;;  %v315_v28 = vand.u32 4294901760, %v1639_v20  ;;  %v1660_v29 = vsub.f32 %v40_v12, %v1641_v21  ;;  %v46_v30 = vsel %vm29_vm0, %v16_v18, 0  ;;  %v167_v32 = vand.u32 4294901760, %v1650_v24 }
   0x8   :  { %v147_v27 = vand.u32 4294901760, %v1637_v19  ;;  %v157_v31 = vand.u32 4294901760, %v1647_v23  ;;  %v309_v33 = vsub.f32 %v1631_v17, %v308_v25  ;;  %v1667_v34 = vsub.f32 %v43_v22, %v1653_v26 }
   0x9   :  { %v316_v36 = vsub.f32 %v1639_v20, %v315_v28  ;;  %v177_v37 = vand.u32 4294901760, %v1660_v29  ;;  %v1495_v38 = vpack.c.bf16 %v315_v28, %v308_v25  ;;  %v168_v42 = vsub.f32 %v1650_v24, %v167_v32 }
   0xa   :  { %1399 = vmatprep.mubr.f32.mxu0 %v147_v27  ;;  %v148_v35 = vsub.f32 %v1637_v19, %v147_v27  ;;  %v158_v40 = vsub.f32 %v1647_v23, %v157_v31  ;;  %v310_v41 = vand.u32 4294901760, %v309_v33  ;;  %v187_v43 = vand.u32 4294901760, %v1667_v34 }
   0xb   :  { %1400 = vmatmul.mubr.f32.vlgmr.msra.gmra.mrb[0].mxu0 %v157_v31  ;;  %v317_v45 = vand.u32 4294901760, %v316_v36  ;;  %1496 = vmatprep.subr.bf16.mxu0 %v1495_v38  ;;  %v178_v46 = vsub.f32 %v1660_v29, %v177_v37  ;;  %v1679_v47 = vand.u32 4294901760, %v46_v30  ;;  %v169_v52 = vand.u32 4294901760, %v168_v42 }
   0xc   :  { %v149_v44 = vand.u32 4294901760, %v148_v35  ;;  %1402 = vmatprep.mubr.f32.mxu0 %v167_v32  ;;  %v159_v51 = vand.u32 4294901760, %v158_v40  ;;  %1498 = vmatpush3.bf16.msra.mxu0 %v1495_v38  ;;  %v188_v53 = vsub.f32 %v1667_v34, %v187_v43  ;;  %v49_v54 = vsel %vm29_vm0, %v17_v39, 0  ;;  %v25_v40 = vld [vmem:[%s1927_s0 + $0x70] sm:$0xff] }
   0xd   :  { %v1483_v55 = vpack.c.bf16 %v317_v45, %v310_v41  ;;  %v179_v56 = vand.u32 4294901760, %v178_v46  ;;  %v1693_v57 = vsub.f32 %v46_v30, %v1679_v47  ;;  %v1695_v58 = vand.u32 4294901760, %v49_v54  ;;  %1500 = vmatprep.subr.bf16.mxu0 %v1625_v14  ;;  %v24_v30 = vld [vmem:[%s1927_s0 + $0x68] sm:$0xff] }
   0xe   :  { %1315 = vmatprep.mubr.f32.mxu1 %v149_v44  ;;  %v189_v62 = vand.u32 4294901760, %v188_v53  ;;  %v52_v63 = vsel %vm29_vm0, %v18_v48, 0  ;;  %v55_v0 = vsel %vm29_vm0, %v19_v49, 0  ;;  %v58_v1 = vsel %vm29_vm0, %v20_v50, 0  ;;  %v26_v50 = vld [vmem:[%s1927_s0 + $0x78] sm:$0xff] }
   0xf   :  { %1316 = vmatmul.mubr.f32.vlgmr.msra.gmra.mrb[0].mxu1 %v159_v51  ;;  %1403 = vmatmul.mubr.f32.gmra.mrb[2].mxu0 %v177_v37  ;;  %v197_v2 = vand.u32 4294901760, %v1693_v57  ;;  %v1712_v3 = vsub.f32 %v49_v54, %v1695_v58  ;;  %v1714_v4 = vand.u32 4294901760, %v52_v63  ;;  %v1716_v5 = vand.u32 4294901760, %v55_v0 }
  0x10   :  { %1484 = vmatprep.subr.bf16.mxu1 %v1483_v55  ;;  %1318 = vmatprep.mubr.f32.mxu1 %v169_v52  ;;  %v1718_v6 = vand.u32 4294901760, %v58_v1  ;;  %v61_v7 = vsel %vm29_vm0, %v21_v59, 0  ;;  %v64_v8 = vsel %vm29_vm0, %v22_v60, 0  ;;  %v67_v10 = vsel %vm29_vm0, %v23_v61, 0 }
  0x11   :  { %1486 = vmatpush3.bf16.msra.mxu1 %v1483_v55  ;;  %1405 = vmatprep.mubr.f32.mxu0 %v187_v43  ;;  %v207_v11 = vand.u32 4294901760, %v1712_v3  ;;  %v198_v12 = vsub.f32 %v1693_v57, %v197_v2  ;;  %v1726_v13 = vsub.f32 %v52_v63, %v1714_v4  ;;  %v1729_v18 = vsub.f32 %v55_v0, %v1716_v5 }
  0x12   :  { %v1732_v22 = vsub.f32 %v58_v1, %v1718_v6  ;;  %v1734_v25 = vand.u32 4294901760, %v61_v7  ;;  %v1736_v27 = vand.u32 4294901760, %v64_v8  ;;  %v1738_v28 = vand.u32 4294901760, %v67_v10 }
  0x13   :  { %1319 = vmatmul.mubr.f32.gmra.mrb[2].mxu1 %v179_v56  ;;  %1406 = vmatmul.mubr.f32.gmra.mrb[4].mxu0 %v197_v2  ;;  %v199_v31 = vand.u32 4294901760, %v198_v12  ;;  %v217_v32 = vand.u32 4294901760, %v1726_v13  ;;  %v208_v33 = vsub.f32 %v1712_v3, %v207_v11  ;;  %v227_v35 = vand.u32 4294901760, %v1729_v18 }
  0x14   :  { %1321 = vmatprep.mubr.f32.mxu1 %v189_v62  ;;  %1408 = vmatprep.mubr.f32.mxu0 %v207_v11  ;;  %v237_v36 = vand.u32 4294901760, %v1732_v22  ;;  %v1748_v37 = vsub.f32 %v61_v7, %v1734_v25  ;;  %v1751_v38 = vsub.f32 %v64_v8, %v1736_v27  ;;  %v1754_v39 = vsub.f32 %v67_v10, %v1738_v28 }
  0x15   :  { %v209_v41 = vand.u32 4294901760, %v208_v33  ;;  %v218_v42 = vsub.f32 %v1726_v13, %v217_v32  ;;  %v228_v43 = vsub.f32 %v1729_v18, %v227_v35  ;;  %v70_v44 = vsel %vm29_vm0, %v24_v30, 0 }
  0x16   :  { %v247_v45 = vand.u32 4294901760, %v1748_v37  ;;  %v238_v46 = vsub.f32 %v1732_v22, %v237_v36  ;;  %v257_v48 = vand.u32 4294901760, %v1751_v38  ;;  %v267_v49 = vand.u32 4294901760, %v1754_v39 }
  0x17   :  { %1322 = vmatmul.mubr.f32.gmra.mrb[4].mxu1 %v199_v31  ;;  %1409 = vmatmul.mubr.f32.gmra.mrb[6].mxu0 %v217_v32  ;;  %v219_v51 = vand.u32 4294901760, %v218_v42  ;;  %v229_v52 = vand.u32 4294901760, %v228_v43  ;;  %v1769_v53 = vand.u32 4294901760, %v70_v44  ;;  %v73_v54 = vsel %vm29_vm0, %v25_v40, 0 }
  0x18   :  { %1324 = vmatprep.mubr.f32.mxu1 %v209_v41  ;;  %1411 = vmatprep.mubr.f32.mxu0 %v227_v35  ;;  %v248_v55 = vsub.f32 %v1748_v37, %v247_v45  ;;  %v1776_v59 = vand.u32 4294901760, %v73_v54  ;;  %v76_v60 = vsel %vm29_vm0, %v26_v50, 0  ;;  %v1487_v61 = vpack.c.bf16 %v1639_v20, %v1631_v17 }
  0x19   :  { %v1774_v56 = vsub.f32 %v70_v44, %v1769_v53  ;;  %v239_v62 = vand.u32 4294901760, %v238_v46  ;;  %v258_v63 = vsub.f32 %v1751_v38, %v257_v48  ;;  %v1782_v0 = vand.u32 4294901760, %v76_v60 }
  0x1a   :  { %v249_v1 = vand.u32 4294901760, %v248_v55  ;;  %v268_v7 = vsub.f32 %v1754_v39, %v267_v49  ;;  %v1787_v8 = vsub.f32 %v73_v54, %v1776_v59  ;;  %1488 = vmatprep.subr.bf16.mxu1 %v1487_v61 }
  0x1b   :  { %1325 = vmatmul.mubr.f32.gmra.mrb[6].mxu1 %v219_v51  ;;  %1412 = vmatmul.mubr.f32.gmra.mrb[8].mxu0 %v237_v36  ;;  %v277_v2 = vand.u32 4294901760, %v1774_v56  ;;  %v1790_v10 = vsub.f32 %v76_v60, %v1782_v0  ;;  %v259_v20 = vand.u32 4294901760, %v258_v63 }
  0x1c   :  { %1327 = vmatprep.mubr.f32.mxu1 %v229_v52  ;;  %1414 = vmatprep.mubr.f32.mxu0 %v247_v45  ;;  %v287_v17 = vand.u32 4294901760, %v1787_v8  ;;  %v269_v30 = vand.u32 4294901760, %v268_v7 }
  0x1d   :  { %v278_v11 = vsub.f32 %v1774_v56, %v277_v2  ;;  %v297_v12 = vand.u32 4294901760, %v1790_v10 }
  0x1e   :  { %v288_v31 = vsub.f32 %v1787_v8, %v287_v17 }
  0x1f   :  { %1328 = vmatmul.mubr.f32.gmra.mrb[8].mxu1 %v239_v62  ;;  %1415 = vmatmul.mubr.f32.gmra.mrb[10].mxu0 %v257_v48  ;;  %v279_v32 = vand.u32 4294901760, %v278_v11  ;;  %v298_v33 = vsub.f32 %v1790_v10, %v297_v12 }
  0x20   :  { %1330 = vmatprep.mubr.f32.mxu1 %v249_v1  ;;  %1417 = vmatprep.mubr.f32.mxu0 %v267_v49  ;;  %v289_v35 = vand.u32 4294901760, %v288_v31 }
  0x21   :  { %v299_v36 = vand.u32 4294901760, %v298_v33 }
  0x23   :  { %1331 = vmatmul.mubr.f32.gmra.mrb[10].mxu1 %v259_v20  ;;  %1418 = vmatmul.mubr.f32.gmra.mrb[12].mxu0 %v277_v2 }
  0x24   :  { %1333 = vmatprep.mubr.f32.mxu1 %v269_v30  ;;  %1420 = vmatprep.mubr.f32.mxu0 %v287_v17 }
  0x27   :  { %1334 = vmatmul.mubr.f32.gmra.mrb[12].mxu1 %v279_v32  ;;  %1421 = vmatmul.mubr.f32.gmra.mrb[14].mxu0 %v297_v12 }
  0x28   :  { %1336 = vmatprep.mubr.f32.mxu1 %v289_v35  ;;  %1427 = vmatprep.mubr.f32.mxu0 %v1617_v9 }
  0x2b   :  { %1337 = vmatmul.mubr.f32.gmra.mrb[14].mxu1 %v299_v36  ;;  %1428 = vmatmul.mubr.f32.vlgmr.msra.gmra.mrb[0].mxu0 %v1627_v15 }
  0x2c   :  { %1343 = vmatprep.mubr.f32.mxu1 %v1617_v9  ;;  %1430 = vmatprep.mubr.f32.mxu0 %v1629_v16 }
  0x2d   :  { %1502 = vmatpush3.bf16.msra.mxu0 %v1625_v14 }
  0x2f   :  { %1344 = vmatmul.mubr.f32.vlgmr.msra.gmra.mrb[0].mxu1 %v1627_v15  ;;  %1431 = vmatmul.mubr.f32.gmra.mrb[2].mxu0 %v1641_v21 }
  0x30   :  { %1490 = vmatpush3.bf16.msra.mxu1 %v1487_v61  ;;  %1346 = vmatprep.mubr.f32.mxu1 %v1629_v16 }
  0x31   :  { %1433 = vmatprep.mubr.f32.mxu0 %v1653_v26 }
  0x33   :  { %1347 = vmatmul.mubr.f32.gmra.mrb[2].mxu1 %v1641_v21  ;;  %1434 = vmatmul.mubr.f32.gmra.mrb[4].mxu0 %v1679_v47 }
  0x34   :  { %1349 = vmatprep.mubr.f32.mxu1 %v1653_v26  ;;  %1436 = vmatprep.mubr.f32.mxu0 %v1695_v58 }
  0x37   :  { %1350 = vmatmul.mubr.f32.gmra.mrb[4].mxu1 %v1679_v47  ;;  %1437 = vmatmul.mubr.f32.gmra.mrb[6].mxu0 %v1714_v4 }
  0x38   :  { %1352 = vmatprep.mubr.f32.mxu1 %v1695_v58  ;;  %1439 = vmatprep.mubr.f32.mxu0 %v1716_v5 }
  0x3b   :  { %1353 = vmatmul.mubr.f32.gmra.mrb[6].mxu1 %v1714_v4  ;;  %1440 = vmatmul.mubr.f32.gmra.mrb[8].mxu0 %v1718_v6 }
  0x3c   :  { %1355 = vmatprep.mubr.f32.mxu1 %v1716_v5  ;;  %1442 = vmatprep.mubr.f32.mxu0 %v1734_v25 }
  0x3f   :  { %1356 = vmatmul.mubr.f32.gmra.mrb[8].mxu1 %v1718_v6  ;;  %1443 = vmatmul.mubr.f32.gmra.mrb[10].mxu0 %v1736_v27 }
  0x40   :  { %1358 = vmatprep.mubr.f32.mxu1 %v1734_v25  ;;  %1445 = vmatprep.mubr.f32.mxu0 %v1738_v28 }
  0x43   :  { %1359 = vmatmul.mubr.f32.gmra.mrb[10].mxu1 %v1736_v27  ;;  %1446 = vmatmul.mubr.f32.gmra.mrb[12].mxu0 %v1769_v53 }
  0x44   :  { %1361 = vmatprep.mubr.f32.mxu1 %v1738_v28  ;;  %1448 = vmatprep.mubr.f32.mxu0 %v1776_v59 }
  0x47   :  { %1362 = vmatmul.mubr.f32.gmra.mrb[12].mxu1 %v1769_v53  ;;  %1449 = vmatmul.mubr.f32.gmra.mrb[14].mxu0 %v1782_v0 }
  0x48   :  { %1364 = vmatprep.mubr.f32.mxu1 %v1776_v59  ;;  %1455 = vmatprep.mubr.f32.mxu0 %v1617_v9 }
  0x4b   :  { %1365 = vmatmul.mubr.f32.gmra.mrb[14].mxu1 %v1782_v0  ;;  %1456 = vmatmul.mubr.f32.vlgmr.msra.gmra.mrb[0].mxu0 %v1627_v15 }
  0x4c   :  { %1371 = vmatprep.mubr.f32.mxu1 %v1637_v19  ;;  %1458 = vmatprep.mubr.f32.mxu0 %v1629_v16 }
  0x4f   :  { %1372 = vmatmul.mubr.f32.vlgmr.msra.gmra.mrb[0].mxu1 %v1647_v23  ;;  %1459 = vmatmul.mubr.f32.gmra.mrb[2].mxu0 %v1641_v21 }
  0x50   :  { %1374 = vmatprep.mubr.f32.mxu1 %v1650_v24  ;;  %1461 = vmatprep.mubr.f32.mxu0 %v1653_v26 }
  0x53   :  { %1375 = vmatmul.mubr.f32.gmra.mrb[2].mxu1 %v1660_v29  ;;  %1462 = vmatmul.mubr.f32.gmra.mrb[4].mxu0 %v1679_v47 }
  0x54   :  { %1377 = vmatprep.mubr.f32.mxu1 %v1667_v34  ;;  %1464 = vmatprep.mubr.f32.mxu0 %v1695_v58 }
  0x57   :  { %1378 = vmatmul.mubr.f32.gmra.mrb[4].mxu1 %v1693_v57  ;;  %1465 = vmatmul.mubr.f32.gmra.mrb[6].mxu0 %v1714_v4 }
  0x58   :  { %1380 = vmatprep.mubr.f32.mxu1 %v1712_v3  ;;  %1467 = vmatprep.mubr.f32.mxu0 %v1716_v5 }
  0x5b   :  { %1381 = vmatmul.mubr.f32.gmra.mrb[6].mxu1 %v1726_v13  ;;  %1468 = vmatmul.mubr.f32.gmra.mrb[8].mxu0 %v1718_v6 }
  0x5c   :  { %1383 = vmatprep.mubr.f32.mxu1 %v1729_v18  ;;  %1470 = vmatprep.mubr.f32.mxu0 %v1734_v25 }
  0x5f   :  { %1384 = vmatmul.mubr.f32.gmra.mrb[8].mxu1 %v1732_v22  ;;  %1471 = vmatmul.mubr.f32.gmra.mrb[10].mxu0 %v1736_v27 }
  0x60   :  { %1386 = vmatprep.mubr.f32.mxu1 %v1748_v37  ;;  %1473 = vmatprep.mubr.f32.mxu0 %v1738_v28 }
  0x63   :  { %1387 = vmatmul.mubr.f32.gmra.mrb[10].mxu1 %v1751_v38  ;;  %1474 = vmatmul.mubr.f32.gmra.mrb[12].mxu0 %v1769_v53 }
  0x64   :  { %1389 = vmatprep.mubr.f32.mxu1 %v1754_v39  ;;  %1476 = vmatprep.mubr.f32.mxu0 %v1776_v59 }
  0x67   :  { %1390 = vmatmul.mubr.f32.gmra.mrb[12].mxu1 %v1774_v56  ;;  %1477 = vmatmul.mubr.f32.gmra.mrb[14].mxu0 %v1782_v0 }
  0x68   :  { %1392 = vmatprep.mubr.f32.mxu1 %v1787_v8 }
  0x6b   :  { %1393 = vmatmul.mubr.f32.gmra.mrb[14].mxu1 %v1790_v10 }
 0x11e   :  { %v1457_v9 = vpop.f32.mrb[0].mxu0 }
 0x11f   :  { %v1088_v14 = vpop.f32.mrb[1].mxu0 }
 0x122   :  { %v1373_v15 = vpop.f32.mrb[0].mxu1  ;;  %v1460_v16 = vpop.f32.mrb[2].mxu0 }
 0x123   :  { %v1503_v19 = vadd.f32 %v1457_v9, %v1373_v15  ;;  %v548_v21 = vpop.f32.mrb[1].mxu1  ;;  %v1100_v23 = vpop.f32.mrb[3].mxu0 }
 0x124   :  { %v1504_v24 = vadd.f32 %v1088_v14, %v548_v21 }
 0x125   :  { %1184 = vst.msk [vmem:[%s1928_s2 + $0x8] sm:$0xff] %vm1182_vm1, %v1503_v19 }
 0x126   :  { %1183 = vst.msk [vmem:[%s1928_s2] sm:$0xff] %vm1182_vm1, %v1504_v24  ;;  %v1376_v26 = vpop.f32.mrb[2].mxu1  ;;  %v1463_v29 = vpop.f32.mrb[4].mxu0 }
 0x127   :  { %v1505_v34 = vadd.f32 %v1460_v16, %v1376_v26  ;;  %v562_v47 = vpop.f32.mrb[3].mxu1  ;;  %v1112_v57 = vpop.f32.mrb[5].mxu0 }
 0x128   :  { %v1506_v58 = vadd.f32 %v1100_v23, %v562_v47 }
 0x129   :  { %1186 = vst.msk [vmem:[%s1928_s2 + $0x18] sm:$0xff] %vm1182_vm1, %v1505_v34 }
 0x12a   :  { %1185 = vst.msk [vmem:[%s1928_s2 + $0x10] sm:$0xff] %vm1182_vm1, %v1506_v58  ;;  %v1379_v3 = vpop.f32.mrb[4].mxu1  ;;  %v1466_v4 = vpop.f32.mrb[6].mxu0 }
 0x12b   :  { %v1507_v5 = vadd.f32 %v1463_v29, %v1379_v3  ;;  %v576_v6 = vpop.f32.mrb[5].mxu1  ;;  %v1124_v13 = vpop.f32.mrb[7].mxu0 }
 0x12c   :  { %v1508_v18 = vadd.f32 %v1112_v57, %v576_v6 }
 0x12d   :  { %1188 = vst.msk [vmem:[%s1928_s2 + $0x28] sm:$0xff] %vm1182_vm1, %v1507_v5 }
 0x12e   :  { %1187 = vst.msk [vmem:[%s1928_s2 + $0x20] sm:$0xff] %vm1182_vm1, %v1508_v18  ;;  %v1382_v22 = vpop.f32.mrb[6].mxu1  ;;  %v1469_v25 = vpop.f32.mrb[8].mxu0 }
 0x12f   :  { %v1509_v27 = vadd.f32 %v1466_v4, %v1382_v22  ;;  %v590_v28 = vpop.f32.mrb[7].mxu1  ;;  %v1136_v37 = vpop.f32.mrb[9].mxu0 }
 0x130   :  { %v1510_v38 = vadd.f32 %v1124_v13, %v590_v28 }
 0x131   :  { %1190 = vst.msk [vmem:[%s1928_s2 + $0x38] sm:$0xff] %vm1182_vm1, %v1509_v27 }
 0x132   :  { %1189 = vst.msk [vmem:[%s1928_s2 + $0x30] sm:$0xff] %vm1182_vm1, %v1510_v38  ;;  %v1385_v39 = vpop.f32.mrb[8].mxu1  ;;  %v1472_v40 = vpop.f32.mrb[10].mxu0 }
 0x133   :  { %v1511_v41 = vadd.f32 %v1469_v25, %v1385_v39  ;;  %v604_v42 = vpop.f32.mrb[9].mxu1  ;;  %v1148_v43 = vpop.f32.mrb[11].mxu0 }
 0x134   :  { %v1512_v44 = vadd.f32 %v1136_v37, %v604_v42 }
 0x135   :  { %1192 = vst.msk [vmem:[%s1928_s2 + $0x48] sm:$0xff] %vm1182_vm1, %v1511_v41 }
 0x136   :  { %1191 = vst.msk [vmem:[%s1928_s2 + $0x40] sm:$0xff] %vm1182_vm1, %v1512_v44  ;;  %v1388_v45 = vpop.f32.mrb[10].mxu1  ;;  %v1475_v46 = vpop.f32.mrb[12].mxu0 }
 0x137   :  { %v1513_v48 = vadd.f32 %v1472_v40, %v1388_v45  ;;  %v618_v49 = vpop.f32.mrb[11].mxu1  ;;  %v1160_v50 = vpop.f32.mrb[13].mxu0 }
 0x138   :  { %v1514_v51 = vadd.f32 %v1148_v43, %v618_v49 }
 0x139   :  { %1194 = vst.msk [vmem:[%s1928_s2 + $0x58] sm:$0xff] %vm1182_vm1, %v1513_v48 }
 0x13a   :  { %1193 = vst.msk [vmem:[%s1928_s2 + $0x50] sm:$0xff] %vm1182_vm1, %v1514_v51  ;;  %v1391_v52 = vpop.f32.mrb[12].mxu1  ;;  %v1478_v53 = vpop.f32.mrb[14].mxu0 }
 0x13b   :  { %v1515_v54 = vadd.f32 %v1475_v46, %v1391_v52  ;;  %v632_v55 = vpop.f32.mrb[13].mxu1  ;;  %v1172_v56 = vpop.f32.mrb[15].mxu0 }
 0x13c   :  { %v1516_v59 = vadd.f32 %v1160_v50, %v632_v55 }
 0x13d   :  { %1196 = vst.msk [vmem:[%s1928_s2 + $0x68] sm:$0xff] %vm1182_vm1, %v1515_v54 }
 0x13e   :  { %1195 = vst.msk [vmem:[%s1928_s2 + $0x60] sm:$0xff] %vm1182_vm1, %v1516_v59  ;;  %v1394_v60 = vpop.f32.mrb[14].mxu1 }
 0x13f   :  { %v1517_v61 = vadd.f32 %v1478_v53, %v1394_v60  ;;  %v646_v62 = vpop.f32.mrb[15].mxu1 }
 0x140   :  { %v1518_v63 = vadd.f32 %v1172_v56, %v646_v62 }
 0x141   :  { %1198 = vst.msk [vmem:[%s1928_s2 + $0x78] sm:$0xff] %vm1182_vm1, %v1517_v61 }
 0x142   :  { %1197 = vst.msk [vmem:[%s1928_s2 + $0x70] sm:$0xff] %vm1182_vm1, %v1518_v63 }

</bundles_post_ra>
